<compile_context>
chip_gen: v5e
topology: v5e:2x2
jax: 0.10.0
libtpu: 0.0.40
codegen_flags: <defaults>
</compile_context>

<pallas_src>
import functools
import math

import jax
import jax.numpy as jnp
from jax.experimental import pallas as pl
from jax.experimental.pallas import tpu as pltpu


def _mix_kernel(c620_x_ref, t651_x_ref, c620_mf_ref, t651_mf_ref, out_ref):
    # Fused elementwise multiply-add on the VPU.
    out_ref[...] = (c620_x_ref[...] * c620_mf_ref[...]
                    + t651_x_ref[...] * t651_mf_ref[...])


def _round_up(x, m):
    return ((x + m - 1) // m) * m


def _sublane_multiple(dtype):
    # (8, 128) tiles are in 32-bit words; packed dtypes need more sublane rows.
    itemsize = jnp.dtype(dtype).itemsize
    return max(8, 32 // itemsize)   # 8 f32/i32, 16 bf16/f16, 32 i8/fp8


@functools.lru_cache(maxsize=None)
def _chip_config():
    """(tile_bytes per operand per step, #TensorCores/chip, vmem limit cap)."""
    kind = ""
    try:
        kind = jax.devices()[0].device_kind.lower().replace(" ", "")
    except Exception:
        pass
    if "v7" in kind or "tpu7" in kind:
        # 3.2 TB/s HBM per TC, 64 MiB VMEM/TC, 2 TCs/chip: big tiles, even grid.
        return (4 << 20, 2, 48 << 20)
    if "v6" in kind:
        # ~1.4 TB/s, 128 MiB VMEM, single TC.
        return (2 << 20, 1, 48 << 20)
    if "v5lite" in kind or "v5e" in kind:
        # ~0.82 TB/s, 128 MiB VMEM (16 MiB scoped default), single TC.
        return (1 << 20, 1, 48 << 20)
    if "v5p" in kind or "v5" in kind or "v4" in kind:
        # Megacore (2 TCs presented as one device), plenty of VMEM.
        return (2 << 20, 2, 48 << 20)
    # Unknown: conservative.
    return (1 << 20, 1, 32 << 20)


def tr_c620_t651_mix(c620_x, t651_x, c620_mf, t651_mf, *,
                     donate_c620_x=False, min_pallas_bytes=1 << 20):
    """Computes c620_x * c620_mf + t651_x * t651_mf elementwise via Pallas."""
    assert c620_x.shape == t651_x.shape == c620_mf.shape == t651_mf.shape, \
        "all four operands must share the same shape"
    assert c620_x.dtype == t651_x.dtype == c620_mf.dtype == t651_mf.dtype, \
        "all four operands must share the same dtype"

    orig_shape = c620_x.shape
    dtype = c620_x.dtype
    itemsize = jnp.dtype(dtype).itemsize
    total = math.prod(orig_shape) if orig_shape else 1

    # Small/medium inputs: Pallas launch + reshapes lose to XLA's fused
    # elementwise (already at the HBM roofline, and it can fuse with neighbours).
    if total * itemsize < min_pallas_bytes:
        return c620_x * c620_mf + t651_x * t651_mf

    tile_bytes, num_cores, vmem_cap = _chip_config()
    sub = _sublane_multiple(dtype)
    lane = 128

    # Lane-dense slab width: wider when evenly divisible (fewer sublane rows
    # per tile -> fewer vld/vst address iterations), otherwise 128.
    cols = 512 if (total % 512 == 0 and total >= 512 * sub) else lane
    main_total = (total // cols) * cols
    tail = total - main_total            # < cols elements, handled by XLA epilogue
    rows = main_total // cols
    if rows < sub:
        # Not even one minimal tile of work.
        return c620_x * c620_mf + t651_x * t651_mf

    # Row-tile: target `tile_bytes` per operand per grid step, never exceeding
    # the slab (Pallas masks the partial final block -- no padding copies).
    tr = max(sub, (tile_bytes // (cols * itemsize)) // sub * sub)
    tr = min(tr, max(sub, (rows // sub) * sub))

    if num_cores >= 2 and rows > sub:
        # Feed both TensorCores: at least 2 grid steps, and an even step count
        # so the "parallel" axis splits evenly across the cores.
        tr = min(tr, max(sub, _round_up(pl.cdiv(rows, 2), sub)))
        steps = pl.cdiv(rows, tr)
        if steps > 1 and steps % 2 == 1:
            tr = max(sub, _round_up(pl.cdiv(rows, steps + 1), sub))
    grid_steps = pl.cdiv(rows, tr)

    flats = [a.reshape(-1) for a in (c620_x, t651_x, c620_mf, t651_mf)]

    def _slab(flat):
        m = flat if tail == 0 else flat[:main_total]
        return m.reshape(rows, cols)

    a2, b2, c2, d2 = map(_slab, flats)

    spec = pl.BlockSpec((tr, cols), lambda i: (i, 0))

    # Scoped-VMEM request: 5 operands x 2 buffers + headroom; within 64 MiB
    # physical on v7x and the 128 MiB parts, above v5e's 16 MiB default.
    vmem_need = 10 * tr * cols * itemsize
    vmem_limit = int(min(max(vmem_need + (4 << 20), 16 << 20), vmem_cap))

    cost = pl.CostEstimate(
        flops=3 * main_total,                    # 2 muls + 1 add per element
        transcendentals=0,
        bytes_accessed=5 * main_total * itemsize,
    )

    out2d = pl.pallas_call(
        _mix_kernel,
        out_shape=jax.ShapeDtypeStruct((rows, cols), dtype),
        grid_spec=pltpu.PrefetchScalarGridSpec(
            num_scalar_prefetch=0,
            grid=(grid_steps,),
            in_specs=[spec, spec, spec, spec],
            out_specs=spec,
        ),
        compiler_params=pltpu.CompilerParams(
            dimension_semantics=("parallel",),
            vmem_limit_bytes=vmem_limit,
        ),
        cost_estimate=cost,
        input_output_aliases={0: 0} if donate_c620_x else {},
    )(a2, b2, c2, d2)

    out_flat = out2d.reshape(-1)
    if tail:
        # Rare (<cols elements) tail: tiny XLA epilogue instead of padding the
        # whole array (which would double HBM traffic for all 4 inputs).
        tail_out = (flats[0][main_total:] * flats[2][main_total:]
                    + flats[1][main_total:] * flats[3][main_total:])
        out_flat = jnp.concatenate([out_flat, tail_out])
    return out_flat.reshape(orig_shape)


if __name__ == "__main__":
    key = jax.random.PRNGKey(0)

    def _check(idx, shape, dtype, tol, force_pallas):
        k1, k2, k3, k4 = jax.random.split(jax.random.fold_in(key, idx), 4)
        c620_x = jax.random.normal(k1, shape, dtype=jnp.float32).astype(dtype)
        t651_x = jax.random.normal(k2, shape, dtype=jnp.float32).astype(dtype)
        c620_mf = jax.random.normal(k3, shape, dtype=jnp.float32).astype(dtype)
        t651_mf = jax.random.normal(k4, shape, dtype=jnp.float32).astype(dtype)

        kwargs = {"min_pallas_bytes": 0} if force_pallas else {}
        out = tr_c620_t651_mix(c620_x, t651_x, c620_mf, t651_mf, **kwargs)
        out = jax.block_until_ready(out)

        ref = c620_x * c620_mf + t651_x * t651_mf
        assert out.shape == ref.shape
        assert out.dtype == ref.dtype
        assert jnp.allclose(out.astype(jnp.float32), ref.astype(jnp.float32),
                            atol=tol, rtol=tol), f"mismatch for {shape} {dtype}"

    # Small NCHW shape consistent with the module; force the Pallas path so the
    # kernel itself is exercised (default routing would use plain XLA here).
    _check(0, (2, 4, 16, 16), jnp.float32, 1e-6, force_pallas=True)
    # 1 MiB f32 shape: takes the Pallas path under default routing.
    _check(1, (4, 8, 64, 128), jnp.float32, 1e-6, force_pallas=False)
    # Awkward shape (total % 128 != 0): partial row blocks + XLA tail epilogue.
    _check(2, (3, 5, 17, 19), jnp.float32, 1e-6, force_pallas=True)
    # bf16 path (sublane multiple of 16, 512-wide slab).
    _check(3, (2, 8, 32, 96), jnp.bfloat16, 2e-2, force_pallas=True)

    print("KERNEL_OK")
</pallas_src>

<mosaic_0001>
module attributes {stable_mosaic.version = 11 : i64} {
  func.func @_mix_kernel(%arg0: i32, %arg1: memref<16x128xf32, #tpu.memory_space<vmem>>, %arg2: memref<16x128xf32, #tpu.memory_space<vmem>>, %arg3: memref<16x128xf32, #tpu.memory_space<vmem>>, %arg4: memref<16x128xf32, #tpu.memory_space<vmem>>, %arg5: memref<16x128xf32, #tpu.memory_space<vmem>>) attributes {dimension_semantics = [#tpu.dimension_semantics<parallel>], iteration_bounds = array<i64: 1>, scalar_prefetch = 0 : i64, scratch_operands = 0 : i64, tpu.core_type = #tpu.core_type<tc>, window_params = [{transform_indices = @transform_0, window_bounds = array<i64: 16, 128>}, {transform_indices = @transform_1, window_bounds = array<i64: 16, 128>}, {transform_indices = @transform_2, window_bounds = array<i64: 16, 128>}, {transform_indices = @transform_3, window_bounds = array<i64: 16, 128>}, {transform_indices = @transform_4, window_bounds = array<i64: 16, 128>}]} {
    %c0 = arith.constant 0 : index
    %c0_0 = arith.constant 0 : index
    %0 = vector.load %arg1[%c0, %c0_0] : memref<16x128xf32, #tpu.memory_space<vmem>>, vector<16x128xf32>
    %c0_1 = arith.constant 0 : index
    %c0_2 = arith.constant 0 : index
    %1 = vector.load %arg3[%c0_1, %c0_2] : memref<16x128xf32, #tpu.memory_space<vmem>>, vector<16x128xf32>
    %2 = arith.mulf %0, %1 : vector<16x128xf32>
    %c0_3 = arith.constant 0 : index
    %c0_4 = arith.constant 0 : index
    %3 = vector.load %arg2[%c0_3, %c0_4] : memref<16x128xf32, #tpu.memory_space<vmem>>, vector<16x128xf32>
    %c0_5 = arith.constant 0 : index
    %c0_6 = arith.constant 0 : index
    %4 = vector.load %arg4[%c0_5, %c0_6] : memref<16x128xf32, #tpu.memory_space<vmem>>, vector<16x128xf32>
    %5 = arith.mulf %3, %4 : vector<16x128xf32>
    %6 = arith.addf %2, %5 : vector<16x128xf32>
    %c0_7 = arith.constant 0 : index
    %c0_8 = arith.constant 0 : index
    %7 = vector.load %arg5[%c0_7, %c0_8] : memref<16x128xf32, #tpu.memory_space<vmem>>, vector<16x128xf32>
    tpu.vector_store %arg5[%c0_7, %c0_8], %6 {strides = array<i32>} : memref<16x128xf32, #tpu.memory_space<vmem>>, vector<16x128xf32>,
    return
  }
  func.func @transform_0(%arg0: i32) -> (i32, i32) {
    %c0_i32 = arith.constant 0 : i32
    %c0_i32_0 = arith.constant 0 : i32
    return %arg0, %c0_i32 : i32, i32
  }
  func.func @transform_1(%arg0: i32) -> (i32, i32) {
    %c0_i32 = arith.constant 0 : i32
    %c0_i32_0 = arith.constant 0 : i32
    return %arg0, %c0_i32 : i32, i32
  }
  func.func @transform_2(%arg0: i32) -> (i32, i32) {
    %c0_i32 = arith.constant 0 : i32
    %c0_i32_0 = arith.constant 0 : i32
    return %arg0, %c0_i32 : i32, i32
  }
  func.func @transform_3(%arg0: i32) -> (i32, i32) {
    %c0_i32 = arith.constant 0 : i32
    %c0_i32_0 = arith.constant 0 : i32
    return %arg0, %c0_i32 : i32, i32
  }
  func.func @transform_4(%arg0: i32) -> (i32, i32) {
    %c0_i32 = arith.constant 0 : i32
    %c0_i32_0 = arith.constant 0 : i32
    return %arg0, %c0_i32 : i32, i32
  }
}

</mosaic_0001>

<bundles_post_ra>
// kernel: tpu_custom_call.1
= control target key start
LH: loop header
LB: loop body
LE: loop exit
PB: predicated region body
PF: predicated region fallthrough
CT: control target
= control target key end

     0   :  { %9 = vsyncpa [#allocation3], 0  ;;  %s315_s0 = inlined_call_operand.hbm [shape: f32[16,128], index: 0, kind: input, shape index: {}]   ;;  %s316_s1 = inlined_call_operand.hbm [shape: f32[16,128], index: 1, kind: input, shape index: {}]   ;;  %s317_s2 = inlined_call_operand.hbm [shape: f32[16,128], index: 2, kind: input, shape index: {}]   ;;  %s318_s3 = inlined_call_operand.hbm [shape: f32[16,128], index: 3, kind: input, shape index: {}]   ;;  %s319_s4 = inlined_call_operand.hbm [shape: f32[16,128], index: 4, kind: output, shape index: {}]  }
   0x1   :  { %10 = vsyncpa [#allocation6], 0 }
   0x2   :  { %11 = vsyncpa [#allocation9], 0 }
   0x3   :  { %12 = vsyncpa [#allocation4], 0  ;;  %s30_s17 = sshll.u32 %s316_s1, 4  ;;  %s253_s18 = smov [#allocation5]   ;;  %s31_s17 = int_to_ptr.hbm [resolvable:$true] %s30_s17 }
   0x4   :  { %s32_s19 = sshll.u32 %s253_s18, 4  ;;  %s17_s22 = sshll.u32 %s315_s0, 4  ;;  %s33_s19 = int_to_ptr.vmem [resolvable:$true] %s32_s19  ;;  %s18_s22 = int_to_ptr.hbm [resolvable:$true] %s17_s22 }
   0x5   :  { %s254_s23 = smov 128   ;;  %s255_s24 = smov 8  }
   0x6   :  { %38 = dma.hbm_to_vmem [thread:$0]  %s31_s17, 256, %s33_s19, [#allocation6], %s254_s23, %s254_s23, %s255_s24  }
   0x7   :  { %s256_s25 = smov [#allocation2]   ;;  %s43_s1 = sshll.u32 %s317_s2, 4  ;;  %s44_s1 = int_to_ptr.hbm [resolvable:$true] %s43_s1 }
   0x8   :  { %s19_s26 = sshll.u32 %s256_s25, 4  ;;  %s56_s30 = sshll.u32 %s318_s3, 4  ;;  %s20_s26 = int_to_ptr.vmem [resolvable:$true] %s19_s26  ;;  %s57_s30 = int_to_ptr.hbm [resolvable:$true] %s56_s30 }
   0x9   :  { %25 = dma.hbm_to_vmem [thread:$0]  %s18_s22, 256, %s20_s26, [#allocation3], %s254_s23, %s254_s23, %s255_s24  }
   0xa   :  { %s257_s5 = smov [#allocation7]   ;;  %s258_s7 = smov [#allocation8]  }
   0xb   :  { %s45_s6 = sshll.u32 %s257_s5, 4  ;;  %s58_s2 = sshll.u32 %s258_s7, 4  ;;  %s46_s6 = int_to_ptr.vmem [resolvable:$true] %s45_s6  ;;  %s59_s2 = int_to_ptr.vmem [resolvable:$true] %s58_s2 }
   0xc   :  { %51 = dma.hbm_to_vmem [thread:$0]  %s44_s1, 256, %s46_s6, [#allocation6], %s254_s23, %s254_s23, %s255_s24  }
   0xd   :  { %64 = dma.hbm_to_vmem [thread:$0]  %s57_s30, 256, %s59_s2, [#allocation9], %s254_s23, %s254_s23, %s255_s24  }
   0xe   :  { %245 = dma.done.wait [#allocation3], 256  }
   0xf   :  { %246 = vsyncadd [#allocation3], 4294967040 }
  0x10   :  { %247 = dma.done.wait [#allocation6], 512  }
  0x11   :  { %248 = vsyncadd [#allocation6], 4294966784 }
  0x12   :  { %249 = dma.done.wait [#allocation9], 256  }
  0x13   :  { %250 = vsyncadd [#allocation9], 4294967040  ;;  %v81_v0 = vld [vmem:[#allocation2] sm:$0xff]  ;;  %v87_v2 = vld [vmem:[#allocation5] sm:$0xff]  ;;  %s259_s3 = smov [#allocation10]   ;;  %s103_s11 = sshll.u32 %s319_s4, 4  ;;  %s104_s11 = int_to_ptr.hbm [resolvable:$true] %s103_s11 }
  0x14   :  { %v83_v1 = vld [vmem:[#allocation7] sm:$0xff]  ;;  %v89_v4 = vld [vmem:[#allocation8] sm:$0xff]  ;;  %v82_v5 = vld [vmem:[#allocation2 + $0x8] sm:$0xff]  ;;  %s101_s8 = sshll.u32 %s259_s3, 4  ;;  %s102_s8 = int_to_ptr.vmem [resolvable:$true] %s101_s8 }
  0x15   :  { %v85_v3 = vmul.f32 %v83_v1, %v81_v0  ;;  %v84_v6 = vld [vmem:[#allocation7 + $0x8] sm:$0xff]  ;;  %v91_v7 = vmul.f32 %v89_v4, %v87_v2  ;;  %v88_v9 = vld [vmem:[#allocation5 + $0x8] sm:$0xff] }
  0x16   :  { %v86_v8 = vmul.f32 %v84_v6, %v82_v5  ;;  %v90_v10 = vld [vmem:[#allocation8 + $0x8] sm:$0xff] }
  0x17   :  { %v92_v11 = vmul.f32 %v90_v10, %v88_v9  ;;  %v93_v12 = vadd.f32 %v91_v7, %v85_v3 }
  0x19   :  { %v94_v13 = vadd.f32 %v92_v11, %v86_v8  ;;  %95 = vst [vmem:[#allocation10] sm:$0xff] %v93_v12 }
  0x1b   :  { %96 = vst [vmem:[#allocation10 + $0x8] sm:$0xff] %v94_v13 }
  0x1c   :  { %109 = dma.vmem_to_hbm [thread:$0]  %s102_s8, 256, %s104_s11, [#allocation4], %s254_s23, %s254_s23, %s255_s24  }
  0x1d   :  { %251 = dma.done.wait [#allocation4], 256  }
  0x1e   :  { %252 = vsyncadd [#allocation4], 4294967040 }
  0x1f   :  { %114 = vsyncpa [#allocation3], 1 }
  0x20   :  { %115 = vsyncpa [#allocation6], 1 }
  0x21   :  { %116 = vsyncpa [#allocation9], 1 }
  0x22   :  { %117 = vsyncpa [#allocation4], 1 }

</bundles_post_ra>
